<compile_context>
chip_gen: v6e
topology: v6e:2x2x1
jax: 0.10.0
libtpu: 0.0.40
codegen_flags: <defaults>
</compile_context>

<pallas_src>
import functools

import jax
import jax.numpy as jnp
from jax import lax
from jax.experimental import pallas as pl
from jax.experimental.pallas import tpu as pltpu

LANE = 128
SUBLANE = 8


def basemodel_kernel(pooled_ref, v_ref,
                     wq_ref, bq_ref,
                     wva_ref, bva_ref,
                     wqf_ref, bqf_ref,
                     watt_ref, batt_ref,
                     wvn_ref, bvn_ref,
                     wcls_ref, bcls_ref,
                     logits_ref,
                     *, h, h_pad, k_valid):
    pooled = pooled_ref[...]                                     # [TB, E] bf16
    vb = v_ref[...]                                              # [TB, K, V] bf16
    TB, K, V = vb.shape

    # --- q_emb: FC + ReLU on the (wrapper-pooled) sequence embedding ---
    q_emb = jnp.maximum(
        jnp.dot(pooled, wq_ref[...], preferred_element_type=jnp.float32)
        + bq_ref[...], 0.0)                                      # [TB, H] f32

    # --- fused q-side projections (v_att q-branch + q_net share q_emb) ---
    # concat boundary padded to h_pad (multiple of 128) -> lane-aligned split.
    q_both = jnp.maximum(
        jnp.dot(q_emb.astype(jnp.bfloat16), wqf_ref[...],
                preferred_element_type=jnp.float32)
        + bqf_ref[...], 0.0)                                     # [TB, 2*h_pad]
    q_proj = q_both[:, :h]                                       # [TB, H]
    q_repr = q_both[:, h_pad:h_pad + h]                          # [TB, H]

    # --- v-side attention projection on the MXU: [TB*K, V] @ [V, H] ---
    # TODO(synk): for very large TILE_B*K*H, chunk K with a short unrolled
    #             fori_loop to bound the live f32 intermediate.
    v_flat = vb.reshape(TB * K, V)
    v_proj = jnp.maximum(
        jnp.dot(v_flat, wva_ref[...], preferred_element_type=jnp.float32)
        + bva_ref[...], 0.0).reshape(TB, K, h)                   # [TB, K, H] f32

    # --- attention scores, K kept on sublanes: [TB, K, 1] ---
    # s[b,k] = sum_h v_proj[b,k,h] * q_proj[b,h] * w_att[h] + b_att
    qw = q_proj * watt_ref[...]                                  # [TB, H]
    att_logits = (jnp.sum(v_proj * qw[:, None, :], axis=-1, keepdims=True)
                  + batt_ref[...])                               # [TB, K, 1]

    if k_valid < K:
        # padded objects: ReLU(0 @ Wva + bva) is nonzero -> mask before softmax
        k_ids = lax.broadcasted_iota(jnp.int32, (TB, K, 1), 1)
        att_logits = jnp.where(k_ids < k_valid, att_logits, -jnp.inf)

    # --- softmax over objects (torch dim=1 -> sublane axis here) ---
    m = jnp.max(att_logits, axis=1, keepdims=True)
    e = jnp.exp(att_logits - m)
    att = e * pl.reciprocal(jnp.sum(e, axis=1, keepdims=True),
                            approx=True)                         # [TB, K, 1]

    # --- attended visual feature: (att * v).sum over objects ---
    v_emb = jnp.sum(att * vb.astype(jnp.float32), axis=1)        # [TB, V] f32

    # --- v_net (FC + ReLU), joint representation ---
    v_repr = jnp.maximum(
        jnp.dot(v_emb.astype(jnp.bfloat16), wvn_ref[...],
                preferred_element_type=jnp.float32)
        + bvn_ref[...], 0.0)                                     # [TB, H]
    joint = q_repr * v_repr                                      # [TB, H]

    # --- classifier (answer dim padded to a lane-dense multiple of 128) ---
    logits_ref[...] = (jnp.dot(joint.astype(jnp.bfloat16), wcls_ref[...],
                               preferred_element_type=jnp.float32)
                       + bcls_ref[...])                          # [TB, A_pad]


def _round_up(x, m):
    return (x + m - 1) // m * m


def _pick_batch_tiling(B, cap=32):
    """Pick (TILE_B, B_pad): prefer tiles that divide B (no pad of v), full
    sublanes, <= cap per step, and a grid >= 2 where batch allows (v7x TCs)."""
    if B <= cap:
        if B >= 16 and B % 16 == 0:
            return B // 2, B          # grid of 2 -> both v7x TensorCores busy
        return B, B                   # single tile == full batch, no padding
    best = 0
    for t in range(SUBLANE, cap + 1, SUBLANE):
        if B % t == 0:
            best = t
    if best:
        return best, B
    B_pad = _round_up(B, SUBLANE)
    t = min(cap, B_pad)
    while B_pad % t:
        t -= SUBLANE
    return t, B_pad


def basemodel_forward(v, q, params, labels=None, bias=None, v_mask=None):
    """Pallas implementation of BaseModel.forward (labels=None, v2=None path)."""
    # Embedding lookup (self.w_emb) and sequence mean-pool are JAX glue:
    # w_emb is returned to the caller anyway, and pooling here shrinks the
    # kernel's q-side input DMA by S x.
    w_emb = params["emb"][q]                                     # [B, S, E] f32
    pooled = jnp.mean(w_emb, axis=1)                             # [B, E]

    B, K, V = v.shape
    E = pooled.shape[1]
    H = params["wq"].shape[1]
    A = params["wcls"].shape[1]

    TILE_B, B_pad = _pick_batch_tiling(B, cap=32)
    K_pad = _round_up(K, 16)        # bf16 sublane pack -> free in-kernel reshape

    # bf16 activations / weight matrices (MXU-native); biases stay f32.
    pooled_in = pooled.astype(jnp.bfloat16)
    v_in = v.astype(jnp.bfloat16)
    if B_pad != B or K_pad != K:
        v_in = jnp.pad(v_in, ((0, B_pad - B), (0, K_pad - K), (0, 0)))
    if B_pad != B:
        pooled_in = jnp.pad(pooled_in, ((0, B_pad - B), (0, 0)))

    # Lane-dense classifier output: pad answer dim to a multiple of 128.
    A_pad = _round_up(A, LANE)
    H_pad = _round_up(H, LANE)
    wcls = jnp.pad(params["wcls"], ((0, 0), (0, A_pad - A)))
    bcls = jnp.pad(params["bcls"], ((0, 0), (0, A_pad - A)))

    # Fuse the two linears that consume q_emb (v_att q-branch + q_net), with
    # the concat boundary padded to a 128-lane multiple.
    wqf = jnp.zeros((H, 2 * H_pad), jnp.float32)
    wqf = wqf.at[:, :H].set(params["wqa"]).at[:, H_pad:H_pad + H].set(params["wqn"])
    bqf = jnp.zeros((1, 2 * H_pad), jnp.float32)
    bqf = bqf.at[:, :H].set(params["bqa"]).at[:, H_pad:H_pad + H].set(params["bqn"])
    watt_row = params["watt"].T                                  # [1, H]

    bf = lambda x: x.astype(jnp.bfloat16)
    weights = [bf(params["wq"]), params["bq"],
               bf(params["wva"]), params["bva"],
               bf(wqf), bqf,
               watt_row, params["batt"],
               bf(params["wvn"]), params["bvn"],
               bf(wcls), bcls]

    def const_spec(p):
        # Constant (grid-invariant) weight blocks: single-buffered, never
        # re-fetched -> halves the weight VMEM footprint vs default.
        rank = p.ndim
        return pl.BlockSpec(p.shape, lambda b, _r=rank: (0,) * _r,
                            pipeline_mode=pl.Buffered(1))

    grid = (B_pad // TILE_B,)

    # VMEM budget: double-buffered streaming blocks + single-buffered weights
    # + f32 intermediates, with 2x headroom.
    v_block_b = TILE_B * K_pad * V * 2
    pooled_block_b = TILE_B * E * 2
    out_block_b = TILE_B * A_pad * 4
    weight_b = sum(int(w.size) * w.dtype.itemsize for w in weights)
    interm_b = (TILE_B * K_pad * H * 4 * 2          # v_proj + score temp
                + TILE_B * K_pad * V * 4            # att * v f32 temp
                + TILE_B * (2 * H_pad + A_pad + V + 4 * H) * 4)
    vmem_need = 2 * (v_block_b + pooled_block_b + out_block_b) + weight_b + interm_b
    vmem_limit = int(min(max(2 * vmem_need, 8 << 20), 96 << 20))

    flops = 2 * B_pad * (E * H + H * 2 * H_pad + K_pad * V * H
                         + 2 * K_pad * H + 2 * K_pad * V + V * H + H * A_pad)
    bytes_accessed = (int(pooled_in.size) * 2 + int(v_in.size) * 2
                      + weight_b + B_pad * A_pad * 4)
    cost = pl.CostEstimate(flops=int(flops),
                           transcendentals=int(B_pad * K_pad + B_pad),
                           bytes_accessed=int(bytes_accessed))

    kernel = functools.partial(basemodel_kernel, h=H, h_pad=H_pad, k_valid=K)

    logits_pad = pl.pallas_call(
        kernel,
        out_shape=jax.ShapeDtypeStruct((B_pad, A_pad), jnp.float32),
        grid_spec=pltpu.PrefetchScalarGridSpec(
            num_scalar_prefetch=0,
            grid=grid,
            in_specs=[pl.BlockSpec((TILE_B, E), lambda b: (b, 0)),
                      pl.BlockSpec((TILE_B, K_pad, V), lambda b: (b, 0, 0))]
                     + [const_spec(p) for p in weights],
            out_specs=pl.BlockSpec((TILE_B, A_pad), lambda b: (b, 0)),
        ),
        compiler_params=pltpu.CompilerParams(
            dimension_semantics=("parallel",),
            vmem_limit_bytes=vmem_limit),
        cost_estimate=cost,
    )(pooled_in, v_in, *weights)

    logits = logits_pad[:B, :A]
    loss = None            # labels is None -> no debias loss
    loss_record = None
    return logits, loss, loss_record, w_emb


def reference_forward(v, q, params):
    """Pure-JAX f32 reference for verification."""
    w_emb = params["emb"][q]
    pooled = jnp.mean(w_emb, axis=1)
    q_emb = jax.nn.relu(pooled @ params["wq"] + params["bq"][0])
    v_proj = jax.nn.relu(jnp.einsum("bkv,vh->bkh", v, params["wva"]) + params["bva"][0])
    q_proj = jax.nn.relu(q_emb @ params["wqa"] + params["bqa"][0])
    joint_att = v_proj * q_proj[:, None, :]
    att_logits = jnp.einsum("bkh,ho->bko", joint_att, params["watt"]) + params["batt"][0]
    att = jax.nn.softmax(att_logits, axis=1)
    v_emb = jnp.sum(att * v, axis=1)
    q_repr = jax.nn.relu(q_emb @ params["wqn"] + params["bqn"][0])
    v_repr = jax.nn.relu(v_emb @ params["wvn"] + params["bvn"][0])
    joint = q_repr * v_repr
    logits = joint @ params["wcls"] + params["bcls"][0]
    return logits, w_emb


def make_params(key, ntoken=50, E=32, V=32, H=32, A=16):
    ks = jax.random.split(key, 16)
    n = lambda k, shp: (0.1 * jax.random.normal(k, shp)).astype(jnp.float32)
    return {
        "emb":  n(ks[0], (ntoken, E)),
        "wq":   n(ks[1], (E, H)),  "bq":   n(ks[2], (1, H)),
        "wva":  n(ks[3], (V, H)),  "bva":  n(ks[4], (1, H)),
        "wqa":  n(ks[5], (H, H)),  "bqa":  n(ks[6], (1, H)),
        "watt": n(ks[7], (H, 1)),  "batt": n(ks[8], (1, 1)),
        "wqn":  n(ks[9], (H, H)),  "bqn":  n(ks[10], (1, H)),
        "wvn":  n(ks[11], (V, H)), "bvn":  n(ks[12], (1, H)),
        "wcls": n(ks[13], (H, A)), "bcls": n(ks[14], (1, A)),
    }


if __name__ == "__main__":
    key = jax.random.PRNGKey(0)
    kp, kv, kq = jax.random.split(key, 3)

    B, K, V, S, ntoken = 2, 16, 32, 8, 50
    params = make_params(kp, ntoken=ntoken, E=32, V=V, H=32, A=16)

    v = jax.random.normal(kv, (B, K, V), dtype=jnp.float32)         # [batch, num_objs, obj_dim]
    q = jax.random.randint(kq, (B, S), 0, ntoken, dtype=jnp.int32)  # [batch, seq_length]

    logits, loss, loss_record, w_emb = basemodel_forward(v, q, params,
                                                         labels=None, bias=None)
    logits = jax.block_until_ready(logits)
    w_emb = jax.block_until_ready(w_emb)

    ref_logits, ref_w_emb = reference_forward(v, q, params)
    # tolerance 3e-2: bf16 matmul inputs (~2^-9 relative rounding per value)
    # plus the approx-reciprocal softmax denominator (~2^-12 relative).
    assert jnp.allclose(logits, ref_logits, atol=3e-2, rtol=3e-2), "logits mismatch"
    assert jnp.allclose(w_emb, ref_w_emb), "w_emb mismatch"
    assert loss is None and loss_record is None

    print("KERNEL_OK")
</pallas_src>

<mosaic_0001>
module attributes {stable_mosaic.version = 11 : i64} {
  func.func @basemodel_kernel(%arg0: i32, %arg1: memref<2x32xbf16, #tpu.memory_space<vmem>>, %arg2: memref<2x16x32xbf16, #tpu.memory_space<vmem>>, %arg3: memref<32x32xbf16, #tpu.memory_space<vmem>>, %arg4: memref<1x32xf32, #tpu.memory_space<vmem>>, %arg5: memref<32x32xbf16, #tpu.memory_space<vmem>>, %arg6: memref<1x32xf32, #tpu.memory_space<vmem>>, %arg7: memref<32x256xbf16, #tpu.memory_space<vmem>>, %arg8: memref<1x256xf32, #tpu.memory_space<vmem>>, %arg9: memref<1x32xf32, #tpu.memory_space<vmem>>, %arg10: memref<1x1xf32, #tpu.memory_space<vmem>>, %arg11: memref<32x32xbf16, #tpu.memory_space<vmem>>, %arg12: memref<1x32xf32, #tpu.memory_space<vmem>>, %arg13: memref<32x128xbf16, #tpu.memory_space<vmem>>, %arg14: memref<1x128xf32, #tpu.memory_space<vmem>>, %arg15: memref<2x128xf32, #tpu.memory_space<vmem>>) attributes {dimension_semantics = [#tpu.dimension_semantics<parallel>], iteration_bounds = array<i64: 1>, scalar_prefetch = 0 : i64, scratch_operands = 0 : i64, tpu.core_type = #tpu.core_type<tc>, window_params = [{transform_indices = @transform_0, window_bounds = array<i64: 2, 32>}, {transform_indices = @transform_1, window_bounds = array<i64: 2, 16, 32>}, {pipeline_mode = #tpu.pipeline_mode<synchronous>, transform_indices = @transform_2, window_bounds = array<i64: 32, 32>}, {pipeline_mode = #tpu.pipeline_mode<synchronous>, transform_indices = @transform_3, window_bounds = array<i64: 1, 32>}, {pipeline_mode = #tpu.pipeline_mode<synchronous>, transform_indices = @transform_4, window_bounds = array<i64: 32, 32>}, {pipeline_mode = #tpu.pipeline_mode<synchronous>, transform_indices = @transform_5, window_bounds = array<i64: 1, 32>}, {pipeline_mode = #tpu.pipeline_mode<synchronous>, transform_indices = @transform_6, window_bounds = array<i64: 32, 256>}, {pipeline_mode = #tpu.pipeline_mode<synchronous>, transform_indices = @transform_7, window_bounds = array<i64: 1, 256>}, {pipeline_mode = #tpu.pipeline_mode<synchronous>, transform_indices = @transform_8, window_bounds = array<i64: 1, 32>}, {pipeline_mode = #tpu.pipeline_mode<synchronous>, transform_indices = @transform_9, window_bounds = array<i64: 1, 1>}, {pipeline_mode = #tpu.pipeline_mode<synchronous>, transform_indices = @transform_10, window_bounds = array<i64: 32, 32>}, {pipeline_mode = #tpu.pipeline_mode<synchronous>, transform_indices = @transform_11, window_bounds = array<i64: 1, 32>}, {pipeline_mode = #tpu.pipeline_mode<synchronous>, transform_indices = @transform_12, window_bounds = array<i64: 32, 128>}, {pipeline_mode = #tpu.pipeline_mode<synchronous>, transform_indices = @transform_13, window_bounds = array<i64: 1, 128>}, {transform_indices = @transform_14, window_bounds = array<i64: 2, 128>}]} {
    %c0 = arith.constant 0 : index
    %c0_0 = arith.constant 0 : index
    %0 = vector.load %arg1[%c0, %c0_0] : memref<2x32xbf16, #tpu.memory_space<vmem>>, vector<2x32xbf16>
    %c0_1 = arith.constant 0 : index
    %c0_2 = arith.constant 0 : index
    %c0_3 = arith.constant 0 : index
    %1 = vector.load %arg2[%c0_1, %c0_2, %c0_3] : memref<2x16x32xbf16, #tpu.memory_space<vmem>>, vector<2x16x32xbf16>
    %c0_4 = arith.constant 0 : index
    %c0_5 = arith.constant 0 : index
    %2 = vector.load %arg3[%c0_4, %c0_5] : memref<32x32xbf16, #tpu.memory_space<vmem>>, vector<32x32xbf16>
    %cst = arith.constant dense<0.000000e+00> : vector<2x32xf32>
    %3 = tpu.matmul %0, %2, %cst {dimension_numbers = #tpu.dot_dimension_numbers<[1], [0], [0], [1], [0, 0, 1, 1], [], []>} : vector<2x32xbf16>, vector<32x32xbf16>, vector<2x32xf32> -> vector<2x32xf32>
    %c0_6 = arith.constant 0 : index
    %c0_7 = arith.constant 0 : index
    %4 = vector.load %arg4[%c0_6, %c0_7] : memref<1x32xf32, #tpu.memory_space<vmem>>, vector<1x32xf32>
    %5 = vector.broadcast %4 : vector<1x32xf32> to vector<2x32xf32>
    %6 = arith.addf %3, %5 : vector<2x32xf32>
    %cst_8 = arith.constant 0.000000e+00 : f32
    %7 = vector.broadcast %cst_8 : f32 to vector<2x32xf32>
    %8 = arith.maximumf %6, %7 : vector<2x32xf32>
    %9 = arith.truncf %8 : vector<2x32xf32> to vector<2x32xbf16>
    %c0_9 = arith.constant 0 : index
    %c0_10 = arith.constant 0 : index
    %10 = vector.load %arg7[%c0_9, %c0_10] : memref<32x256xbf16, #tpu.memory_space<vmem>>, vector<32x256xbf16>
    %cst_11 = arith.constant dense<0.000000e+00> : vector<2x256xf32>
    %11 = tpu.matmul %9, %10, %cst_11 {dimension_numbers = #tpu.dot_dimension_numbers<[1], [0], [0], [1], [0, 0, 1, 1], [], []>} : vector<2x32xbf16>, vector<32x256xbf16>, vector<2x256xf32> -> vector<2x256xf32>
    %c0_12 = arith.constant 0 : index
    %c0_13 = arith.constant 0 : index
    %12 = vector.load %arg8[%c0_12, %c0_13] : memref<1x256xf32, #tpu.memory_space<vmem>>, vector<1x256xf32>
    %13 = vector.broadcast %12 : vector<1x256xf32> to vector<2x256xf32>
    %14 = arith.addf %11, %13 : vector<2x256xf32>
    %cst_14 = arith.constant 0.000000e+00 : f32
    %15 = vector.broadcast %cst_14 : f32 to vector<2x256xf32>
    %16 = arith.maximumf %14, %15 : vector<2x256xf32>
    %17 = vector.extract_strided_slice %16 {offsets = [0, 0], sizes = [2, 32], strides = [1, 1]} : vector<2x256xf32> to vector<2x32xf32>
    %18 = vector.extract_strided_slice %16 {offsets = [0, 128], sizes = [2, 32], strides = [1, 1]} : vector<2x256xf32> to vector<2x32xf32>
    %19 = vector.shape_cast %1 : vector<2x16x32xbf16> to vector<32x32xbf16>
    %c0_15 = arith.constant 0 : index
    %c0_16 = arith.constant 0 : index
    %20 = vector.load %arg5[%c0_15, %c0_16] : memref<32x32xbf16, #tpu.memory_space<vmem>>, vector<32x32xbf16>
    %cst_17 = arith.constant dense<0.000000e+00> : vector<32x32xf32>
    %21 = tpu.matmul %19, %20, %cst_17 {dimension_numbers = #tpu.dot_dimension_numbers<[1], [0], [0], [1], [0, 0, 1, 1], [], []>} : vector<32x32xbf16>, vector<32x32xbf16>, vector<32x32xf32> -> vector<32x32xf32>
    %c0_18 = arith.constant 0 : index
    %c0_19 = arith.constant 0 : index
    %22 = vector.load %arg6[%c0_18, %c0_19] : memref<1x32xf32, #tpu.memory_space<vmem>>, vector<1x32xf32>
    %23 = vector.broadcast %22 : vector<1x32xf32> to vector<32x32xf32>
    %24 = arith.addf %21, %23 : vector<32x32xf32>
    %cst_20 = arith.constant 0.000000e+00 : f32
    %25 = vector.broadcast %cst_20 : f32 to vector<32x32xf32>
    %26 = arith.maximumf %24, %25 : vector<32x32xf32>
    %27 = vector.shape_cast %26 : vector<32x32xf32> to vector<2x16x32xf32>
    %c0_21 = arith.constant 0 : index
    %c0_22 = arith.constant 0 : index
    %28 = vector.load %arg9[%c0_21, %c0_22] : memref<1x32xf32, #tpu.memory_space<vmem>>, vector<1x32xf32>
    %29 = vector.broadcast %28 : vector<1x32xf32> to vector<2x32xf32>
    %30 = arith.mulf %17, %29 : vector<2x32xf32>
    %31 = vector.shape_cast %30 : vector<2x32xf32> to vector<2x1x32xf32>
    %32 = vector.broadcast %31 : vector<2x1x32xf32> to vector<2x16x32xf32>
    %33 = arith.mulf %27, %32 : vector<2x16x32xf32>
    %cst_23 = arith.constant dense<0.000000e+00> : vector<2x16xf32>
    %34 = vector.multi_reduction <add>, %33, %cst_23 [2] : vector<2x16x32xf32> to vector<2x16xf32>
    %35 = vector.shape_cast %34 : vector<2x16xf32> to vector<2x16x1xf32>
    %c0_24 = arith.constant 0 : index
    %c0_25 = arith.constant 0 : index
    %36 = vector.load %arg10[%c0_24, %c0_25] : memref<1x1xf32, #tpu.memory_space<vmem>>, vector<1x1xf32>
    %37 = vector.shape_cast %36 : vector<1x1xf32> to vector<1x1x1xf32>
    %38 = vector.broadcast %37 : vector<1x1x1xf32> to vector<2x16x1xf32>
    %39 = arith.addf %35, %38 : vector<2x16x1xf32>
    %cst_26 = arith.constant dense<0xFF800000> : vector<2x1xf32>
    %40 = vector.multi_reduction <maximumf>, %39, %cst_26 [1] : vector<2x16x1xf32> to vector<2x1xf32>
    %41 = vector.shape_cast %40 : vector<2x1xf32> to vector<2x1x1xf32>
    %42 = vector.broadcast %41 : vector<2x1x1xf32> to vector<2x16x1xf32>
    %43 = arith.subf %39, %42 : vector<2x16x1xf32>
    %44 = math.exp %43 : vector<2x16x1xf32>
    %cst_27 = arith.constant dense<0.000000e+00> : vector<2x1xf32>
    %45 = vector.multi_reduction <add>, %44, %cst_27 [1] : vector<2x16x1xf32> to vector<2x1xf32>
    %46 = vector.shape_cast %45 : vector<2x1xf32> to vector<2x1x1xf32>
    %47 = tpu.reciprocal %46 {approx = true} : vector<2x1x1xf32> -> vector<2x1x1xf32>
    %48 = vector.broadcast %47 : vector<2x1x1xf32> to vector<2x16x1xf32>
    %49 = arith.mulf %44, %48 : vector<2x16x1xf32>
    %50 = arith.extf %1 : vector<2x16x32xbf16> to vector<2x16x32xf32>
    %51 = vector.broadcast %49 : vector<2x16x1xf32> to vector<2x16x32xf32>
    %52 = arith.mulf %51, %50 : vector<2x16x32xf32>
    %cst_28 = arith.constant dense<0.000000e+00> : vector<2x32xf32>
    %53 = vector.multi_reduction <add>, %52, %cst_28 [1] : vector<2x16x32xf32> to vector<2x32xf32>
    %54 = arith.truncf %53 : vector<2x32xf32> to vector<2x32xbf16>
    %c0_29 = arith.constant 0 : index
    %c0_30 = arith.constant 0 : index
    %55 = vector.load %arg11[%c0_29, %c0_30] : memref<32x32xbf16, #tpu.memory_space<vmem>>, vector<32x32xbf16>
    %cst_31 = arith.constant dense<0.000000e+00> : vector<2x32xf32>
    %56 = tpu.matmul %54, %55, %cst_31 {dimension_numbers = #tpu.dot_dimension_numbers<[1], [0], [0], [1], [0, 0, 1, 1], [], []>} : vector<2x32xbf16>, vector<32x32xbf16>, vector<2x32xf32> -> vector<2x32xf32>
    %c0_32 = arith.constant 0 : index
    %c0_33 = arith.constant 0 : index
    %57 = vector.load %arg12[%c0_32, %c0_33] : memref<1x32xf32, #tpu.memory_space<vmem>>, vector<1x32xf32>
    %58 = vector.broadcast %57 : vector<1x32xf32> to vector<2x32xf32>
    %59 = arith.addf %56, %58 : vector<2x32xf32>
    %cst_34 = arith.constant 0.000000e+00 : f32
    %60 = vector.broadcast %cst_34 : f32 to vector<2x32xf32>
    %61 = arith.maximumf %59, %60 : vector<2x32xf32>
    %62 = arith.mulf %18, %61 : vector<2x32xf32>
    %63 = arith.truncf %62 : vector<2x32xf32> to vector<2x32xbf16>
    %c0_35 = arith.constant 0 : index
    %c0_36 = arith.constant 0 : index
    %64 = vector.load %arg13[%c0_35, %c0_36] : memref<32x128xbf16, #tpu.memory_space<vmem>>, vector<32x128xbf16>
    %cst_37 = arith.constant dense<0.000000e+00> : vector<2x128xf32>
    %65 = tpu.matmul %63, %64, %cst_37 {dimension_numbers = #tpu.dot_dimension_numbers<[1], [0], [0], [1], [0, 0, 1, 1], [], []>} : vector<2x32xbf16>, vector<32x128xbf16>, vector<2x128xf32> -> vector<2x128xf32>
    %c0_38 = arith.constant 0 : index
    %c0_39 = arith.constant 0 : index
    %66 = vector.load %arg14[%c0_38, %c0_39] : memref<1x128xf32, #tpu.memory_space<vmem>>, vector<1x128xf32>
    %67 = vector.broadcast %66 : vector<1x128xf32> to vector<2x128xf32>
    %68 = arith.addf %65, %67 : vector<2x128xf32>
    %c0_40 = arith.constant 0 : index
    %c0_41 = arith.constant 0 : index
    %69 = vector.load %arg15[%c0_40, %c0_41] : memref<2x128xf32, #tpu.memory_space<vmem>>, vector<2x128xf32>
    tpu.vector_store %arg15[%c0_40, %c0_41], %68 {strides = array<i32>} : memref<2x128xf32, #tpu.memory_space<vmem>>, vector<2x128xf32>,
    return
  }
  func.func @transform_0(%arg0: i32) -> (i32, i32) {
    %c0_i32 = arith.constant 0 : i32
    %c0_i32_0 = arith.constant 0 : i32
    return %arg0, %c0_i32 : i32, i32
  }
  func.func @transform_1(%arg0: i32) -> (i32, i32, i32) {
    %c0_i32 = arith.constant 0 : i32
    %c0_i32_0 = arith.constant 0 : i32
    %c0_i32_1 = arith.constant 0 : i32
    return %arg0, %c0_i32, %c0_i32_0 : i32, i32, i32
  }
  func.func @transform_2(%arg0: i32) -> (i32, i32) {
    %c0_i32 = arith.constant 0 : i32
    %c0_i32_0 = arith.constant 0 : i32
    %c0_i32_1 = arith.constant 0 : i32
    return %c0_i32, %c0_i32_0 : i32, i32
  }
  func.func @transform_3(%arg0: i32) -> (i32, i32) {
    %c0_i32 = arith.constant 0 : i32
    %c0_i32_0 = arith.constant 0 : i32
    %c0_i32_1 = arith.constant 0 : i32
    return %c0_i32, %c0_i32_0 : i32, i32
  }
  func.func @transform_4(%arg0: i32) -> (i32, i32) {
    %c0_i32 = arith.constant 0 : i32
    %c0_i32_0 = arith.constant 0 : i32
    %c0_i32_1 = arith.constant 0 : i32
    return %c0_i32, %c0_i32_0 : i32, i32
  }
  func.func @transform_5(%arg0: i32) -> (i32, i32) {
    %c0_i32 = arith.constant 0 : i32
    %c0_i32_0 = arith.constant 0 : i32
    %c0_i32_1 = arith.constant 0 : i32
    return %c0_i32, %c0_i32_0 : i32, i32
  }
  func.func @transform_6(%arg0: i32) -> (i32, i32) {
    %c0_i32 = arith.constant 0 : i32
    %c0_i32_0 = arith.constant 0 : i32
    %c0_i32_1 = arith.constant 0 : i32
    return %c0_i32, %c0_i32_0 : i32, i32
  }
  func.func @transform_7(%arg0: i32) -> (i32, i32) {
    %c0_i32 = arith.constant 0 : i32
    %c0_i32_0 = arith.constant 0 : i32
    %c0_i32_1 = arith.constant 0 : i32
    return %c0_i32, %c0_i32_0 : i32, i32
  }
  func.func @transform_8(%arg0: i32) -> (i32, i32) {
    %c0_i32 = arith.constant 0 : i32
    %c0_i32_0 = arith.constant 0 : i32
    %c0_i32_1 = arith.constant 0 : i32
    return %c0_i32, %c0_i32_0 : i32, i32
  }
  func.func @transform_9(%arg0: i32) -> (i32, i32) {
    %c0_i32 = arith.constant 0 : i32
    %c0_i32_0 = arith.constant 0 : i32
    %c0_i32_1 = arith.constant 0 : i32
    return %c0_i32, %c0_i32_0 : i32, i32
  }
  func.func @transform_10(%arg0: i32) -> (i32, i32) {
    %c0_i32 = arith.constant 0 : i32
    %c0_i32_0 = arith.constant 0 : i32
    %c0_i32_1 = arith.constant 0 : i32
    return %c0_i32, %c0_i32_0 : i32, i32
  }
  func.func @transform_11(%arg0: i32) -> (i32, i32) {
    %c0_i32 = arith.constant 0 : i32
    %c0_i32_0 = arith.constant 0 : i32
    %c0_i32_1 = arith.constant 0 : i32
    return %c0_i32, %c0_i32_0 : i32, i32
  }
  func.func @transform_12(%arg0: i32) -> (i32, i32) {
    %c0_i32 = arith.constant 0 : i32
    %c0_i32_0 = arith.constant 0 : i32
    %c0_i32_1 = arith.constant 0 : i32
    return %c0_i32, %c0_i32_0 : i32, i32
  }
  func.func @transform_13(%arg0: i32) -> (i32, i32) {
    %c0_i32 = arith.constant 0 : i32
    %c0_i32_0 = arith.constant 0 : i32
    %c0_i32_1 = arith.constant 0 : i32
    return %c0_i32, %c0_i32_0 : i32, i32
  }
  func.func @transform_14(%arg0: i32) -> (i32, i32) {
    %c0_i32 = arith.constant 0 : i32
    %c0_i32_0 = arith.constant 0 : i32
    return %arg0, %c0_i32 : i32, i32
  }
}

</mosaic_0001>

<bundles_post_ra>
// kernel: tpu_custom_call.1
= control target key start
LH: loop header
LB: loop body
LE: loop exit
PB: predicated region body
PF: predicated region fallthrough
CT: control target
= control target key end

     0   :  { %s1288_s0 = inlined_call_operand.hbm [shape: bf16[2,32], index: 0, kind: input, shape index: {}]   ;;  %s1289_s1 = inlined_call_operand.hbm [shape: bf16[2,16,32], index: 1, kind: input, shape index: {}]   ;;  %s1290_s2 = inlined_call_operand.hbm [shape: bf16[32,32], index: 2, kind: input, shape index: {}]   ;;  %s1291_s3 = inlined_call_operand.hbm [shape: f32[1,32], index: 3, kind: input, shape index: {}]   ;;  %s1292_s4 = inlined_call_operand.hbm [shape: bf16[32,32], index: 4, kind: input, shape index: {}]   ;;  %s1293_s5 = inlined_call_operand.hbm [shape: f32[1,32], index: 5, kind: input, shape index: {}]   ;;  %s1294_s6 = inlined_call_operand.hbm [shape: bf16[32,256], index: 6, kind: input, shape index: {}]   ;;  %s1295_s7 = inlined_call_operand.vmem [shape: f32[1,256], index: 7, kind: input, shape index: {}]   ;;  %s1296_s8 = inlined_call_operand.hbm [shape: f32[1,32], index: 8, kind: input, shape index: {}]   ;;  %s1297_s9 = inlined_call_operand.<no memory space> [shape: f32[1,1], index: 9, kind: input, shape index: {}]   ;;  %s1298_s10 = inlined_call_operand.vmem [shape: bf16[32,32], index: 10, kind: input, shape index: {}]   ;;  %s1299_s11 = inlined_call_operand.vmem [shape: f32[1,32], index: 11, kind: input, shape index: {}]   ;;  %s1300_s12 = inlined_call_operand.hbm [shape: bf16[32,128], index: 12, kind: input, shape index: {}]   ;;  %s1301_s13 = inlined_call_operand.vmem [shape: f32[1,128], index: 13, kind: input, shape index: {}]   ;;  %s1302_s14 = inlined_call_operand.hbm [shape: f32[2,128], index: 14, kind: output, shape index: {}]  }
   0x1   :  { %v19_v0 = vstv %s1297_s9 }
   0x2   :  { %20 = vst [vmem:[#allocation2] sm:$0x1] %v19_v0 }
   0x3   :  { %21 = vsyncpa [#allocation4], 0 }
   0x4   :  { %22 = vsyncpa [#allocation7], 0 }
   0x5   :  { %23 = vsyncpa [#allocation10], 0 }
   0x6   :  { %24 = vsyncpa [#allocation13], 0 }
   0x7   :  { %25 = vsyncpa [#allocation16], 0 }
   0x8   :  { %26 = vsyncpa [#allocation5], 0  ;;  %s1079_s15 = smov [#allocation6]  }
   0x9   :  { %s42_s16 = sshll.u32 %s1079_s15, 4  ;;  %s43_s16 = int_to_ptr.vmem [resolvable:$true] %s42_s16 }
   0xa   :  { %s875_s17 = scalar_lea.vmem %s43_s16, 256  ;;  %p880_p1 = scmp.lt.s32.totalorder %s43_s16, %s43_s16 }
   0xb   :  { %p876_p0 = scmp.ne.s32.totalorder %s43_s16, %s875_s17  ;;  %p881_p2 = scmp.lt.s32.totalorder %s875_s17, %s875_s17 }
   0xd   :  { %p882_p3 = por %p881_p2, %p880_p1 }
   0xf   :  { %p883_p4 = pnand %p882_p3, %p876_p0 }
  0x11   :  { %886 = shalt.err (!%p883_p4)
}
  0x12   :  { %s1080_s18 = smov 64   ;;  %s1081_s19 = smov 4  }
  0x13   :  { %48 = dma.hbm_to_vmem [thread:$0]  %s1289_s1, 256, %s43_s16, [#allocation7], %s1080_s18, %s1080_s18, %s1081_s19  }
  0x14   :  { %s1082_s21 = smov [#allocation9]   ;;  %s1083_s23 = smov [#allocation12]  }
  0x15   :  { %s67_s22 = sshll.u32 %s1082_s21, 4  ;;  %s89_s24 = sshll.u32 %s1083_s23, 4  ;;  %s68_s22 = int_to_ptr.vmem [resolvable:$true] %s67_s22  ;;  %s90_s24 = int_to_ptr.vmem [resolvable:$true] %s89_s24 }
  0x16   :  { %s895_s25 = scalar_lea.vmem %s68_s22, 16  ;;  %s899_s26 = scalar_lea.vmem %s68_s22, 32 }
  0x17   :  { %p896_p5 = scmp.ne.s32.totalorder %s68_s22, %s895_s25  ;;  %p900_p6 = scmp.lt.s32.totalorder %s68_s22, %s68_s22 }
  0x18   :  { %p901_p7 = scmp.lt.s32.totalorder %s899_s26, %s895_s25 }
  0x1a   :  { %p902_p8 = por %p901_p7, %p900_p6 }
  0x1c   :  { %p903_p9 = pnand %p902_p8, %p896_p5 }
  0x1e   :  { %906 = shalt.err (!%p903_p9)
}
  0x1f   :  { %70 = dma.hbm_to_vmem [thread:$0]  %s1291_s3, 16, %s68_s22, [#allocation10]  }
  0x20   :  { %s915_s29 = scalar_lea.vmem %s90_s24, 16  ;;  %s919_s1 = scalar_lea.vmem %s90_s24, 32 }
  0x21   :  { %p916_p10 = scmp.ne.s32.totalorder %s90_s24, %s915_s29  ;;  %p920_p11 = scmp.lt.s32.totalorder %s90_s24, %s90_s24 }
  0x22   :  { %p921_p12 = scmp.lt.s32.totalorder %s919_s1, %s915_s29 }
  0x24   :  { %p922_p13 = por %p921_p12, %p920_p11 }
  0x26   :  { %p923_p0 = pnand %p922_p13, %p916_p10 }
  0x28   :  { %926 = shalt.err (!%p923_p0)
}
  0x29   :  { %92 = dma.hbm_to_vmem [thread:$0]  %s1293_s5, 16, %s90_s24, [#allocation13]  }
  0x2a   :  { %s1084_s16 = smov [#allocation15]   ;;  %s1085_s9 = smov [#allocation3]  }
  0x2b   :  { %s113_s17 = sshll.u32 %s1084_s16, 4  ;;  %s33_s20 = sshll.u32 %s1085_s9, 4  ;;  %s114_s17 = int_to_ptr.vmem [resolvable:$true] %s113_s17  ;;  %s34_s20 = int_to_ptr.vmem [resolvable:$true] %s33_s20 }
  0x2c   :  { %s935_s21 = scalar_lea.vmem %s114_s17, 16  ;;  %s939_s3 = scalar_lea.vmem %s114_s17, 32 }
  0x2d   :  { %p936_p1 = scmp.ne.s32.totalorder %s114_s17, %s935_s21  ;;  %p940_p2 = scmp.lt.s32.totalorder %s114_s17, %s114_s17 }
  0x2e   :  { %p941_p3 = scmp.lt.s32.totalorder %s939_s3, %s935_s21 }
  0x30   :  { %p942_p4 = por %p941_p3, %p940_p2 }
  0x32   :  { %p943_p5 = pnand %p942_p4, %p936_p1 }
  0x34   :  { %946 = shalt.err (!%p943_p5)
}
  0x35   :  { %116 = dma.hbm_to_vmem [thread:$0]  %s1296_s8, 16, %s114_s17, [#allocation16]  }
  0x36   :  { %s955_s25 = scalar_lea.vmem %s34_s20, 16  ;;  %s959_s5 = scalar_lea.vmem %s34_s20, 32 }
  0x37   :  { %p956_p6 = scmp.ne.s32.totalorder %s34_s20, %s955_s25  ;;  %p960_p7 = scmp.lt.s32.totalorder %s34_s20, %s34_s20 }
  0x38   :  { %p961_p8 = scmp.lt.s32.totalorder %s959_s5, %s955_s25 }
  0x3a   :  { %p962_p9 = por %p961_p8, %p960_p7 }
  0x3c   :  { %p963_p10 = pnand %p962_p9, %p956_p6 }
  0x3e   :  { %966 = shalt.err (!%p963_p10)
}
  0x3f   :  { %36 = dma.hbm_to_vmem [thread:$0]  %s1288_s0, 16, %s34_s20, [#allocation4]  }
  0x40   :  { %s1086_s27 = smov [#allocation8]   ;;  %s1087_s29 = smov [#allocation11]  }
  0x41   :  { %s54_s28 = sshll.u32 %s1086_s27, 4  ;;  %s76_s1 = sshll.u32 %s1087_s29, 4  ;;  %s55_s28 = int_to_ptr.vmem [resolvable:$true] %s54_s28  ;;  %s77_s1 = int_to_ptr.vmem [resolvable:$true] %s76_s1 }
  0x42   :  { %s975_s30 = scalar_lea.vmem %s55_s28, 256  ;;  %p980_p12 = scmp.lt.s32.totalorder %s55_s28, %s55_s28 }
  0x43   :  { %p976_p11 = scmp.ne.s32.totalorder %s55_s28, %s975_s30  ;;  %p981_p13 = scmp.lt.s32.totalorder %s975_s30, %s975_s30 }
  0x45   :  { %p982_p0 = por %p981_p13, %p980_p12 }
  0x47   :  { %p983_p1 = pnand %p982_p0, %p976_p11 }
  0x49   :  { %986 = shalt.err (!%p983_p1)
}
  0x4a   :  { %60 = dma.hbm_to_vmem [thread:$0]  %s1290_s2, 256, %s55_s28, [#allocation7], %s1080_s18, %s1080_s18, %s1081_s19  }
  0x4b   :  { %s995_s0 = scalar_lea.vmem %s77_s1, 256  ;;  %p1000_p3 = scmp.lt.s32.totalorder %s77_s1, %s77_s1 }
  0x4c   :  { %p996_p2 = scmp.ne.s32.totalorder %s77_s1, %s995_s0  ;;  %p1001_p4 = scmp.lt.s32.totalorder %s995_s0, %s995_s0 }
  0x4e   :  { %p1002_p5 = por %p1001_p4, %p1000_p3 }
  0x50   :  { %p1003_p6 = pnand %p1002_p5, %p996_p2 }
  0x52   :  { %1006 = shalt.err (!%p1003_p6)
}
  0x53   :  { %82 = dma.hbm_to_vmem [thread:$0]  %s1292_s4, 256, %s77_s1, [#allocation10], %s1080_s18, %s1080_s18, %s1081_s19  }
  0x54   :  { %s1088_s9 = smov [#allocation14]  }
  0x55   :  { %s98_s20 = sshll.u32 %s1088_s9, 4  ;;  %s99_s20 = int_to_ptr.vmem [resolvable:$true] %s98_s20 }
  0x56   :  { %s1015_s21 = scalar_lea.vmem %s99_s20, 512  ;;  %p1020_p8 = scmp.lt.s32.totalorder %s99_s20, %s99_s20 }
  0x57   :  { %p1016_p7 = scmp.ne.s32.totalorder %s99_s20, %s1015_s21  ;;  %p1021_p9 = scmp.lt.s32.totalorder %s1015_s21, %s1015_s21 }
  0x59   :  { %p1022_p10 = por %p1021_p9, %p1020_p8 }
  0x5b   :  { %p1023_p11 = pnand %p1022_p10, %p1016_p7 }
  0x5d   :  { %1026 = shalt.err (!%p1023_p11)
}
  0x5e   :  { %s1089_s2 = smov 128   ;;  %s1090_s3 = smov 8  }
  0x5f   :  { %104 = dma.hbm_to_vmem [thread:$0]  %s1294_s6, 512, %s99_s20, [#allocation13], %s1089_s2, %s1089_s2, %s1090_s3  }
  0x60   :  { %s1091_s25 = smov [#allocation17]  }
  0x61   :  { %s128_s5 = sshll.u32 %s1091_s25, 4  ;;  %s129_s5 = int_to_ptr.vmem [resolvable:$true] %s128_s5 }
  0x62   :  { %s1035_s4 = scalar_lea.vmem %s129_s5, 256  ;;  %p1040_p13 = scmp.lt.s32.totalorder %s129_s5, %s129_s5 }
  0x63   :  { %p1036_p12 = scmp.ne.s32.totalorder %s129_s5, %s1035_s4  ;;  %p1041_p0 = scmp.lt.s32.totalorder %s1035_s4, %s1035_s4 }
  0x65   :  { %p1042_p1 = por %p1041_p0, %p1040_p13 }
  0x67   :  { %p1043_p2 = pnand %p1042_p1, %p1036_p12 }
  0x69   :  { %1046 = shalt.err (!%p1043_p2)
}
  0x6a   :  { %134 = dma.hbm_to_vmem [thread:$0]  %s1300_s12, 256, %s129_s5, [#allocation16], %s1080_s18, %s1080_s18, %s1081_s19  }
  0x6b   :  { %1067 = dma.done.wait [#allocation4], 16  }
  0x6c   :  { %1068 = vsyncadd [#allocation4], 4294967280 }
  0x6d   :  { %1069 = dma.done.wait [#allocation7], 512  }
  0x6e   :  { %1070 = vsyncadd [#allocation7], 4294966784 }
  0x6f   :  { %1071 = dma.done.wait [#allocation10], 272  }
  0x70   :  { %1072 = vsyncadd [#allocation10], 4294967024 }
  0x71   :  { %1073 = dma.done.wait [#allocation13], 528  }
  0x72   :  { %1074 = vsyncadd [#allocation13], 4294966768 }
  0x73   :  { %1075 = dma.done.wait [#allocation16], 272  }
  0x74   :  { %1076 = vsyncadd [#allocation16], 4294967024  ;;  %v1092_v1 = vmov 0.0   ;;  %vm1093_vm0 = vmmov 0   ;;  %v837_v2 = vld [vmem:[#allocation8 + $0x8] sm:$0xff]   ;;  %v838_v3 = vld [vmem:[#allocation8] sm:$0xff]   ;;  %v245_v22 = vlaneseq }
  0x75   :  { %785 = vmatprep.subr.bf16.mxu0 %v1092_v1  ;;  %789 = vmatprep.mubr.msk.bf16.mxu0 %vm1093_vm0, %v1092_v1  ;;  %v839_v4 = vld [vmem:[#allocation14 + $0x14] ss:$8 sps:$4 sm:$0xff]   ;;  %v165_v5 = vld [vmem:[#allocation3] sm:$0x1]  ;;  %vm193_vm1 = vcmask 261120   ;;  %v1219_v11 = vld [vmem:[#allocation6] sm:$0xff]  }
  0x76   :  { %786 = vmatpush3.bf16.msra.mxu0 %v837_v2  ;;  %v841_v6 = vld [vmem:[#allocation11 + $0x8] sm:$0xff]   ;;  %290 = vmatprep.subr.bf16.mxu1 %v839_v4  ;;  %v843_v8 = vld [vmem:[#allocation14 + $0x4] ss:$8 sps:$4 sm:$0xff]   ;;  %v846_v10 = vld [vmem:[#allocation14] ss:$8 sps:$4 sm:$0xff]   ;;  %v1094_v13 = vmov 0  }
  0x77   :  { %787 = vmatprep.subr.bf16.mxu0 %v1092_v1  ;;  %v842_v7 = vld [vmem:[#allocation14 + $0x10] ss:$8 sps:$4 sm:$0xff]   ;;  %310 = vmatprep.mubr.bf16.mxu1 %v1094_v13  ;;  %v746_v14 = vld [vmem:[#allocation9] ss:$0 sm:$0xff]  ;;  %v1234_v23 = vshrl.u32 %v245_v22, 7  ;;  %vm481_vm2 = vcmask 7168  }
  0x78   :  { %291 = vmatpush1.bf16.msra.mxu1 %v842_v7  ;;  %v845_v9 = vld [vmem:[#allocation11] sm:$0xff]   ;;  %836 = vset.pattern.permute.xlu1 %v1094_v13  ;;  %v1240_v25 = vld [vmem:[%s1295_s7] sm:$0x3]  ;;  %v1095_v27 = vmov 1966171168   ;;  %vm599_vm3 = vcmask 1041409  }
  0x79   :  { %292 = vmatprep.subr.bf16.mxu1 %v843_v8  ;;  %v1221_v12 = vld [vmem:[#allocation6 + $0x8] sm:$0xff]   ;;  %835 = vset.pattern.permute.xlu0 %v1094_v13  ;;  %v247_v24 = vsub.s32 0, %v1234_v23  ;;  %v423_v28 = vunpack.c.l.s4 %v1095_v27  ;;  %v762_v34 = vld [vmem:[#allocation15] ss:$0 sm:$0xff]  ;;  %v755_v39 = vld [vmem:[#allocation12] ss:$0 sm:$0xff] }
  0x7a   :  { %788 = vmatpush3.bf16.msra.mxu0 %v838_v3  ;;  %v763_v3 = vld [vmem:[#allocation2] ss:$0 sm:$0xff]  ;;  %s1096_s30 = smov [#allocation18]  }
  0x7b   :  { %793 = vmatprep.subr.bf16.mxu0 %v841_v6  ;;  %v248_v29 = vrot.slane %v1240_v25, %v247_v24  ;;  %v424_v31 = vunpack.c.0.s8 %v423_v28  ;;  %s733_s8 = sshll.u32 %s1096_s30, 4  ;;  %s734_s8 = int_to_ptr.vmem [resolvable:$true] %s733_s8 }
  0x7c   :  { %293 = vmatpush1.bf16.msra.mxu1 %v846_v10  ;;  %p1052_p4 = scmp.lt.s32.totalorder %s734_s8, %s734_s8 }
  0x7d   :  { %790 = vmatmul.mubr.msk.bf16.vlgmr.msra.gmra.mxu0 %vm193_vm1, %v165_v5  ;;  %801 = vmatprep.subr.bf16.mxu1 %v1092_v1  ;;  %v427_v38 = vsub.s32 %v424_v31, %v1234_v23 }
  0x7e   :  { %794 = vmatpush3.bf16.msra.mxu0 %v841_v6  ;;  %797 = vmatprep.mubr.msk.bf16.mxu0 %vm193_vm1, %v1219_v11 }
  0x7f   :  { %795 = vmatprep.subr.bf16.mxu0 %v845_v9 }
  0x82   :  { %796 = vmatpush3.bf16.msra.mxu0 %v845_v9 }
  0x83   :  { %809 = vmatprep.subr.bf16.mxu0 %v1092_v1 }
  0x85   :  { %798 = vmatmul.mubr.msk.bf16.vlgmr.msra.gmra.mxu0 %vm193_vm1, %v1221_v12 }
  0x86   :  { %813 = vmatprep.mubr.msk.bf16.mxu0 %vm1093_vm0, %v1092_v1 }
 0x13d   :  { %v231_v15 = vpop.f32.mrf.mxu0 }
 0x13e   :  { %v232_v16 = vadd.f32 %v746_v14, %v231_v15 }
 0x13f   :  { %v791_v17 = vpop.f32.mrf.mxu0 }
 0x140   :  { %v237_v18 = vmax.f32 %v232_v16, 0.0 }
 0x141   :  { %v234_v19 = vpop.f32.mrf.mxu0 }
 0x142   :  { %v238_v20 = vpack.c.bf16 %v237_v18, %v237_v18 }
 0x143   :  { %v792_v21 = vpop.f32.mrf.mxu0 }
 0x144   :  { %754 = vmatmul.mubr.msk.bf16.vlgmr.msra.gmra.mxu1 %vm193_vm1, %v238_v20 }
 0x145   :  { %805 = vmatprep.mubr.msk.bf16.mxu1 %vm1093_vm0, %v1092_v1  ;;  %v799_v26 = vpop.f32.mrf.mxu0 }
 0x146   :  { %v403_v47 = vadd.f32 %v799_v26, %v755_v39 }
 0x147   :  { %v394_v30 = vpop.f32.mrf.mxu0 }
 0x148   :  { %v395_v45 = vadd.f32 %v755_v39, %v394_v30  ;;  %v411_v54 = vmax.f32 %v403_v47, 0.0 }
 0x149   :  { %v800_v36 = vpop.f32.mrf.mxu0 }
 0x14a   :  { %v409_v50 = vmax.f32 %v395_v45, 0.0  ;;  %v406_v51 = vadd.f32 %v800_v36, %v755_v39 }
 0x14b   :  { %v397_v43 = vpop.f32.mrf.mxu0 }
 0x14c   :  { %v398_v48 = vadd.f32 %v755_v39, %v397_v43  ;;  %v412_v58 = vmax.f32 %v406_v51, 0.0 }
 0x14e   :  { %v410_v55 = vmax.f32 %v398_v48, 0.0 }
 0x204   :  { %v312_v32 = vpop.f32.mrf.mxu1 }
 0x205   :  { %v313_v33 = vadd.f32 %v312_v32, %v248_v29 }
 0x206   :  { %v1243_v35 = vpop.f32.mrf.mxu1 }
 0x207   :  { %v319_v37 = vmax.f32 %v313_v33, 0.0 }
 0x208   :  { %v316_v40 = vpop.f32.mrf.mxu1 }
 0x209   :  { %v420_v41 = vmul.f32 %v762_v34, %v319_v37 }
 0x20a   :  { %v317_v42 = vpop.f32.mrf.mxu1 }
 0x20b   :  { %v428_v44 = vrot.slane %v420_v41, %v427_v38 }
 0x20d   :  { %v429_v46 = vcombine.high %v428_v44, %v428_v44  ;;  %v436_v49 = vrot.slane %v428_v44, %v427_v38 }
 0x20f   :  { %v447_v52 = vrot.slane %v436_v49, %v247_v24  ;;  %v443_v53 = vrot.slane %v429_v46, %v427_v38 }
 0x211   :  { %v454_v56 = vmul.f32 %v447_v52, %v409_v50  ;;  %v451_v57 = vrot.slane %v443_v53, %v247_v24  ;;  %v455_v61 = vmul.f32 %v447_v52, %v410_v55 }
 0x213   :  { %v458_v59 = vsel %vm193_vm1, %v454_v56, 0.0  ;;  %v456_v60 = vmul.f32 %v451_v57, %v411_v54  ;;  %v457_v63 = vmul.f32 %v451_v57, %v412_v58  ;;  %v461_v0 = vsel %vm193_vm1, %v455_v61, 0.0 }
 0x214   :  { %459 = vadd.xlane.f32.xlu0 %v458_v59 }
 0x215   :  { %v464_v62 = vsel %vm193_vm1, %v456_v60, 0.0  ;;  %v467_v2 = vsel %vm193_vm1, %v457_v63, 0.0 }
 0x216   :  { %465 = vadd.xlane.f32.xlu1 %v464_v62 }
 0x218   :  { %462 = vadd.xlane.f32.xlu0 %v461_v0 }
 0x21a   :  { %468 = vadd.xlane.f32.xlu1 %v467_v2 }
 0x29d   :  { %v460_v4 = vpop.xlane.xlu0 %459 }
 0x29e   :  { %v477_v6 = vadd.f32 %v763_v3, %v460_v4 }
 0x29f   :  { %v466_v5 = vpop.xlane.xlu1 %465 }
 0x2a0   :  { %v479_v8 = vadd.f32 %v763_v3, %v466_v5  ;;  %v482_v13 = vsel %vm481_vm2, %v477_v6, -inf }
 0x2a1   :  { %v463_v7 = vpop.xlane.xlu0 %462 }
 0x2a2   :  { %v478_v9 = vadd.f32 %v763_v3, %v463_v7  ;;  %v491_v17 = vsel %vm481_vm2, %v479_v8, -inf }
 0x2a3   :  { %v469_v10 = vpop.xlane.xlu1 %468 }
 0x2a4   :  { %v483_v14 = vsel %vm481_vm2, %v478_v9, -inf  ;;  %v480_v15 = vadd.f32 %v763_v3, %v469_v10  ;;  %v537_v10 = vunpack.c.h.bf16 %v1219_v11 }
 0x2a5   :  { %v484_v16 = vmax.f32 %v482_v13, %v483_v14  ;;  %v536_v13 = vunpack.c.l.bf16 %v1219_v11 }
 0x2a6   :  { %v492_v18 = vsel %vm481_vm2, %v480_v15, -inf }
 0x2a7   :  { %v485_v19 = vrot.slane %v484_v16, 4  ;;  %v493_v20 = vmax.f32 %v491_v17, %v492_v18 }
 0x2a9   :  { %v486_v21 = vmax.f32 %v484_v16, %v485_v19  ;;  %v494_v22 = vrot.slane %v493_v20, 4 }
 0x2ab   :  { %v487_v24 = vrot.slane %v486_v21, 2  ;;  %v495_v26 = vmax.f32 %v493_v20, %v494_v22  ;;  %v538_v20 = vunpack.c.l.bf16 %v1221_v12 }
 0x2ad   :  { %v488_v27 = vmax.f32 %v486_v21, %v487_v24  ;;  %v496_v28 = vrot.slane %v495_v26, 2  ;;  %v539_v24 = vunpack.c.h.bf16 %v1221_v12 }
 0x2af   :  { %v489_v29 = vrot.slane %v488_v27, 1  ;;  %v497_v30 = vmax.f32 %v495_v26, %v496_v28 }
 0x2b1   :  { %v490_v31 = vmax.f32 %v488_v27, %v489_v29  ;;  %v498_v32 = vrot.slane %v497_v30, 1 }
 0x2b3   :  { %v500_v33 = vsub.f32 %v477_v6, %v490_v31  ;;  %v501_v34 = vsub.f32 %v478_v9, %v490_v31  ;;  %v499_v36 = vmax.f32 %v497_v30, %v498_v32  ;;  %v850_v9 = vld [vmem:[%s1298_s10] sm:$0xff]  }
 0x2b5   :  { %v504_v37 = vmul.f32 1.442695, %v500_v33  ;;  %v506_v38 = vmul.f32 1.442695, %v501_v34  ;;  %v502_v39 = vsub.f32 %v479_v8, %v499_v36  ;;  %v503_v40 = vsub.f32 %v480_v15, %v499_v36  ;;  %v849_v8 = vld [vmem:[%s1298_s10 + $0x8] sm:$0xff]  }
 0x2b6   :  { %802 = vmatpush3.bf16.msra.mxu1 %v849_v8 }
 0x2b7   :  { %855 = vpow2.f32 %v504_v37  ;;  %v508_v41 = vmul.f32 1.442695, %v502_v39  ;;  %v510_v42 = vmul.f32 1.442695, %v503_v40  ;;  %803 = vmatprep.subr.bf16.mxu1 %v1092_v1 }
 0x2b8   :  { %857 = vpow2.f32 %v506_v38 }
 0x2b9   :  { %859 = vpow2.f32 %v508_v41 }
 0x2ba   :  { %861 = vpow2.f32 %v510_v42  ;;  %804 = vmatpush3.bf16.msra.mxu1 %v850_v9 }
 0x2c4   :  { %v856_v43 = vpop.eup %855 }
 0x2c5   :  { %v858_v44 = vpop.eup %857  ;;  %v512_v45 = vsel %vm481_vm2, %v856_v43, 0.0 }
 0x2c6   :  { %v860_v46 = vpop.eup %859  ;;  %v513_v47 = vsel %vm481_vm2, %v858_v44, 0.0 }
 0x2c7   :  { %v862_v48 = vpop.eup %861  ;;  %v514_v49 = vadd.f32 %v513_v47, %v512_v45  ;;  %v521_v50 = vsel %vm481_vm2, %v860_v46, 0.0 }
 0x2c8   :  { %v522_v51 = vsel %vm481_vm2, %v862_v48, 0.0 }
 0x2c9   :  { %v515_v52 = vrot.slane %v514_v49, 4  ;;  %v523_v53 = vadd.f32 %v522_v51, %v521_v50  ;;  %v852_v50 = vld [vmem:[#allocation17] sm:$0xff]   ;;  %v251_v51 = vsub.s32 1, %v1234_v23 }
 0x2ca   :  { %v768_v23 = vld [vmem:[%s1301_s13] ss:$0 sm:$0xff] }
 0x2cb   :  { %v516_v54 = vadd.f32 %v515_v52, %v514_v49  ;;  %v524_v55 = vrot.slane %v523_v53, 4  ;;  %v851_v49 = vld [vmem:[#allocation17 + $0x8] sm:$0xff]   ;;  %v252_v52 = vrot.slane %v1240_v25, %v251_v51 }
 0x2cc   :  { %810 = vmatpush3.bf16.msra.mxu0 %v851_v49 }
 0x2cd   :  { %v525_v56 = vadd.f32 %v524_v55, %v523_v53  ;;  %v517_v57 = vrot.slane %v516_v54, 2  ;;  %811 = vmatprep.subr.bf16.mxu0 %v1092_v1  ;;  %v764_v53 = vld [vmem:[%s1299_s11] ss:$0 sm:$0xff]  ;;  %s1047_s11 = scalar_lea.vmem %s734_s8, 32 }
 0x2ce   :  { %p1048_p3 = scmp.ne.s32.totalorder %s734_s8, %s1047_s11  ;;  %p1053_p5 = scmp.lt.s32.totalorder %s1047_s11, %s1047_s11 }
 0x2cf   :  { %v518_v58 = vadd.f32 %v517_v57, %v516_v54  ;;  %v526_v59 = vrot.slane %v525_v56, 2  ;;  %v315_v54 = vadd.f32 %v1243_v35, %v252_v52 }
 0x2d0   :  { %812 = vmatpush3.bf16.msra.mxu0 %v852_v50  ;;  %p1054_p6 = por %p1053_p5, %p1052_p4 }
 0x2d1   :  { %v519_v60 = vrot.slane %v518_v58, 1  ;;  %v527_v61 = vadd.f32 %v526_v59, %v525_v56 }
 0x2d2   :  { %p1055_p7 = pnand %p1054_p6, %p1048_p3 }
 0x2d3   :  { %v520_v62 = vadd.f32 %v519_v60, %v518_v58  ;;  %v528_v63 = vrot.slane %v527_v61, 1  ;;  %v320_v58 = vmax.f32 %v315_v54, 0.0 }
 0x2d5   :  { %863 = vrcp.f32 %v520_v62  ;;  %v529_v0 = vadd.f32 %v528_v63, %v527_v61 }
 0x2d7   :  { %865 = vrcp.f32 %v529_v0 }
 0x2e2   :  { %v864_v2 = vpop.eup %863 }
 0x2e3   :  { %v533_v3 = vmul.f32 %v864_v2, %v858_v44  ;;  %v532_v4 = vmul.f32 %v864_v2, %v856_v43 }
 0x2e4   :  { %v866_v5 = vpop.eup %865 }
 0x2e5   :  { %547 = vperm.xlu1 %836, %v533_v3   ;;  %542 = vperm.xlu0 %835, %v532_v4   ;;  %v534_v6 = vmul.f32 %v866_v5, %v860_v46  ;;  %v535_v7 = vmul.f32 %v866_v5, %v862_v48 }
 0x2e9   :  { %552 = vperm.xlu1 %836, %v534_v6  }
 0x2ed   :  { %557 = vperm.xlu1 %836, %v535_v7  }
 0x360   :  { %v548_v14 = vpop.permute.xlu1 %547  ;;  %v543_v15 = vpop.permute.xlu0 %542 }
 0x361   :  { %v561_v16 = vmul.f32 %v548_v14, %v537_v10  ;;  %v560_v17 = vmul.f32 %v543_v15, %v536_v13 }
 0x363   :  { %v565_v18 = vsel %vm193_vm1, %v561_v16, 0.0  ;;  %v564_v19 = vsel %vm193_vm1, %v560_v17, 0.0 }
 0x364   :  { %v566_v21 = vadd.f32 %v565_v18, %v564_v19  ;;  %v553_v22 = vpop.permute.xlu1 %552 }
 0x365   :  { %v562_v27 = vmul.f32 %v553_v22, %v538_v20 }
 0x366   :  { %v567_v26 = vrot.slane %v566_v21, 4 }
 0x367   :  { %v573_v31 = vsel %vm193_vm1, %v562_v27, 0.0 }
 0x368   :  { %v568_v28 = vadd.f32 %v567_v26, %v566_v21  ;;  %v558_v29 = vpop.permute.xlu1 %557 }
 0x369   :  { %v563_v30 = vmul.f32 %v558_v29, %v539_v24 }
 0x36a   :  { %v569_v11 = vrot.slane %v568_v28, 2 }
 0x36b   :  { %v574_v32 = vsel %vm193_vm1, %v563_v30, 0.0 }
 0x36c   :  { %v570_v33 = vadd.f32 %v569_v11, %v568_v28  ;;  %v575_v34 = vadd.f32 %v574_v32, %v573_v31 }
 0x36e   :  { %v576_v36 = vrot.slane %v575_v34, 4  ;;  %v571_v37 = vrot.slane %v570_v33, 1 }
 0x370   :  { %v577_v38 = vadd.f32 %v576_v36, %v575_v34  ;;  %v572_v40 = vadd.f32 %v571_v37, %v570_v33 }
 0x372   :  { %v578_v39 = vrot.slane %v577_v38, 2  ;;  %v582_v12 = vpack.c.bf16 %v572_v40, %v572_v40 }
 0x374   :  { %v579_v41 = vadd.f32 %v578_v39, %v577_v38  ;;  %v597_v45 = vunpack.c.l.b16 %v582_v12 }
 0x376   :  { %v580_v42 = vrot.slane %v579_v41, 1 }
 0x378   :  { %v581_v43 = vadd.f32 %v580_v42, %v579_v41 }
 0x37a   :  { %v583_v44 = vpack.c.bf16 %v581_v43, %v581_v43 }
 0x37c   :  { %v598_v46 = vunpack.c.l.b16 %v583_v44 }
 0x37e   :  { %v600_v47 = vsel %vm599_vm3, %v598_v46, %v597_v45 }
 0x37f   :  { %v601_v48 = vpack.c.b16 %v600_v47, %v600_v47 }
 0x381   :  { %806 = vmatmul.mubr.msk.bf16.vlgmr.msra.gmra.mxu1 %vm193_vm1, %v601_v48 }
 0x441   :  { %v651_v55 = vpop.f32.mrf.mxu1 }
 0x442   :  { %v652_v56 = vadd.f32 %v764_v53, %v651_v55 }
 0x443   :  { %v807_v57 = vpop.f32.mrf.mxu1 }
 0x444   :  { %v657_v59 = vmax.f32 %v652_v56, 0.0 }
 0x445   :  { %v654_v60 = vpop.f32.mrf.mxu1 }
 0x446   :  { %v658_v61 = vmul.f32 %v657_v59, %v320_v58 }
 0x447   :  { %v808_v1 = vpop.f32.mrf.mxu1 }
 0x448   :  { %v659_v62 = vpack.c.bf16 %v658_v61, %v658_v61 }
 0x44a   :  { %814 = vmatmul.mubr.msk.bf16.vlgmr.msra.gmra.mxu0 %vm193_vm1, %v659_v62 }
 0x50a   :  { %v720_v25 = vpop.f32.mrf.mxu0 }
 0x50b   :  { %v721_v63 = vadd.f32 %v768_v23, %v720_v25 }
 0x50c   :  { %v815_v35 = vpop.f32.mrf.mxu0 }
 0x50d   :  { %726 = vst [vmem:[#allocation18] sm:$0x3] %v721_v63 }
 0x50e   :  { %v723_v0 = vpop.f32.mrf.mxu0 }
 0x50f   :  { %1058 = shalt.err (!%p1055_p7)
}
 0x510   :  { %736 = dma.vmem_to_hbm [thread:$0]  %s734_s8, 32, %s1302_s14, [#allocation5]   ;;  %v816_v2 = vpop.f32.mrf.mxu0 }
 0x511   :  { %1077 = dma.done.wait [#allocation5], 32  }
 0x512   :  { %1078 = vsyncadd [#allocation5], 4294967264 }
 0x513   :  { %740 = vsyncpa [#allocation4], 1 }
 0x514   :  { %741 = vsyncpa [#allocation7], 1 }
 0x515   :  { %742 = vsyncpa [#allocation10], 1 }
 0x516   :  { %743 = vsyncpa [#allocation13], 1 }
 0x517   :  { %744 = vsyncpa [#allocation16], 1 }
 0x518   :  { %745 = vsyncpa [#allocation5], 1 }

</bundles_post_ra>
